<compile_context>
chip_gen: v5e
topology: v5e:2x2
jax: 0.10.0
libtpu: 0.0.40
codegen_flags: <defaults>
</compile_context>

<pallas_src>
import functools

import jax
import jax.numpy as jnp
from jax import lax
from jax.experimental import pallas as pl
from jax.experimental.pallas import tpu as pltpu

_LANE = 128   # lane tile
_SUB = 8      # sublane tile


def _mixed_loss_kernel(pred_ref, tgt_ref, out_ref, *,
                       rows, block_rows, inner_blocks,
                       mse_w, l1_w, huber_w, beta):
    c = pl.program_id(0)   # parallel partial-sum slice (megacore on v7x)
    i = pl.program_id(1)   # reduction steps within the slice

    @pl.when(i == 0)
    def _():
        out_ref[...] = jnp.zeros_like(out_ref)

    p = pred_ref[...].astype(jnp.float32)
    t = tgt_ref[...].astype(jnp.float32)
    d = p - t
    ad = jnp.abs(d)
    sq = d * d
    # SmoothL1 (beta=1.0): 0.5*d^2/beta if |d| < beta else |d| - 0.5*beta.
    # (0.5 / beta) is folded at trace time -> no per-element divide.
    huber = jnp.where(ad < beta, (0.5 / beta) * sq, ad - 0.5 * beta)
    # Fused weighted contribution: mean(w1*sq + w2*ad + w3*huber) == weighted loss.
    contrib = mse_w * sq + l1_w * ad + huber_w * huber

    # Mask rows past the end of the slab: ragged edge blocks and clamped
    # duplicate blocks (when n_split does not divide the block count) contain
    # undefined / repeated data and must contribute exactly zero.
    g = c * inner_blocks + i
    row_id = g * block_rows + lax.broadcasted_iota(
        jnp.int32, (block_rows, _LANE), 0)
    contrib = jnp.where(row_id < rows, contrib, 0.0)

    # Fold onto an (8, 128) running partial sum: pure VPU vreg adds each step,
    # no per-step XLU cross-lane reduction and no scalar SMEM read-modify-write.
    out_ref[...] += contrib.reshape(block_rows // _SUB, _SUB, _LANE).sum(axis=0)


def mixed_regression_loss(pred, target, *, mse_weight=0.5, l1_weight=0.3,
                          huber_weight=0.2, block_rows=2048, num_splits=2):
    """Pallas TPU implementation of MixedRegressionLoss.forward."""
    assert pred.shape == target.shape, "pred/target shape mismatch"
    n = int(pred.size)

    p = pred.reshape(-1)        # free flatten, keep original dtype in HBM
    t = target.reshape(-1)

    tile = _SUB * _LANE
    rows = pl.cdiv(n, tile) * _SUB            # row count, multiple of 8
    padded = rows * _LANE
    if padded != n:
        # Only hit when n is not already (8*128)-aligned (typical CNN-head sizes
        # are); zero padding contributes exactly 0 to every partial sum.
        p = jnp.pad(p, (0, padded - n))
        t = jnp.pad(t, (0, padded - n))
    p2 = p.reshape(rows, _LANE)
    t2 = t.reshape(rows, _LANE)

    block_rows = max(_SUB, min((int(block_rows) // _SUB) * _SUB, rows))
    nb = pl.cdiv(rows, block_rows)            # total reduction blocks
    n_split = max(1, min(int(num_splits), nb))
    inner_blocks = pl.cdiv(nb, n_split)

    def in_map(c, i, _inner=inner_blocks, _nb=nb):
        # Clamp so overhanging grid steps re-read a valid block (masked to 0).
        return (jnp.minimum(c * _inner + i, _nb - 1), 0)

    kernel = functools.partial(
        _mixed_loss_kernel,
        rows=rows, block_rows=block_rows, inner_blocks=inner_blocks,
        mse_w=float(mse_weight), l1_w=float(l1_weight),
        huber_w=float(huber_weight), beta=1.0)

    partials = pl.pallas_call(
        kernel,
        out_shape=jax.ShapeDtypeStruct((n_split, _SUB, _LANE), jnp.float32),
        grid=(n_split, inner_blocks),
        in_specs=[
            pl.BlockSpec((block_rows, _LANE), in_map),
            pl.BlockSpec((block_rows, _LANE), in_map),
        ],
        out_specs=pl.BlockSpec((None, _SUB, _LANE), lambda c, i: (c, 0, 0)),
        compiler_params=pltpu.CompilerParams(
            dimension_semantics=("parallel", "arbitrary")),
    )(p2, t2)

    # Single tiny cross-lane reduction + mean scaling outside the hot loop.
    return jnp.sum(partials) / n


def _reference_loss(pred, target, mse_weight=0.5, l1_weight=0.3,
                    huber_weight=0.2):
    d = pred.astype(jnp.float32) - target.astype(jnp.float32)
    ad = jnp.abs(d)
    mse = jnp.mean(d * d)
    l1 = jnp.mean(ad)
    huber = jnp.mean(jnp.where(ad < 1.0, 0.5 * d * d, ad - 0.5))
    return mse_weight * mse + l1_weight * l1 + huber_weight * huber


if __name__ == "__main__":
    key = jax.random.PRNGKey(0)
    k1, k2 = jax.random.split(key)

    # Regression predictions / targets, shaped like a small CNN output batch.
    pred = jax.random.normal(k1, (2, 4, 16, 16), dtype=jnp.float32)
    target = jax.random.normal(k2, (2, 4, 16, 16), dtype=jnp.float32) * 2.0

    loss = mixed_regression_loss(pred, target)
    loss = jax.block_until_ready(loss)
    ref = _reference_loss(pred, target)
    assert jnp.allclose(loss, ref, rtol=1e-5, atol=1e-6), (loss, ref)

    # Secondary check: non-aligned size + multi-block reduction + 2-way split
    # (exercises the ragged-edge mask and the clamped duplicate-block path).
    k3, k4 = jax.random.split(k2)
    pred2 = jax.random.normal(k3, (3, 5, 17, 19), dtype=jnp.float32)
    target2 = jax.random.normal(k4, (3, 5, 17, 19), dtype=jnp.float32) * 1.5
    loss2 = mixed_regression_loss(pred2, target2, block_rows=8, num_splits=2)
    loss2 = jax.block_until_ready(loss2)
    ref2 = _reference_loss(pred2, target2)
    assert jnp.allclose(loss2, ref2, rtol=1e-5, atol=1e-6), (loss2, ref2)

    print("KERNEL_OK")
</pallas_src>

<mosaic_0001>
module attributes {stable_mosaic.version = 11 : i64} {
  func.func @_mixed_loss_kernel(%arg0: i32, %arg1: i32, %arg2: memref<16x128xf32, #tpu.memory_space<vmem>>, %arg3: memref<16x128xf32, #tpu.memory_space<vmem>>, %arg4: memref<1x8x128xf32, #tpu.memory_space<vmem>>) attributes {dimension_semantics = [#tpu.dimension_semantics<parallel>, #tpu.dimension_semantics<arbitrary>], iteration_bounds = array<i64: 1, 1>, scalar_prefetch = 0 : i64, scratch_operands = 0 : i64, tpu.core_type = #tpu.core_type<tc>, window_params = [{transform_indices = @transform_0, window_bounds = array<i64: 16, 128>}, {transform_indices = @transform_1, window_bounds = array<i64: 16, 128>}, {transform_indices = @transform_2, window_bounds = array<i64: 1, 8, 128>}]} {
    %c0_i32 = arith.constant 0 : i32
    %0 = arith.cmpi eq, %arg1, %c0_i32 : i32
    %1 = arith.extui %0 : i1 to i32
    %c0_i32_0 = arith.constant 0 : i32
    %2 = arith.cmpi ne, %1, %c0_i32_0 : i32
    scf.if %2 {
      %cst_18 = arith.constant 0.000000e+00 : f32
      %41 = vector.broadcast %cst_18 : f32 to vector<8x128xf32>
      %c0_19 = arith.constant 0 : index
      %c0_20 = arith.constant 0 : index
      %c0_21 = arith.constant 0 : index
      %42 = vector.load %arg4[%c0_19, %c0_20, %c0_21] : memref<1x8x128xf32, #tpu.memory_space<vmem>>, vector<1x8x128xf32>
      %43 = vector.shape_cast %42 : vector<1x8x128xf32> to vector<8x128xf32>
      %44 = vector.shape_cast %41 : vector<8x128xf32> to vector<1x8x128xf32>
      tpu.vector_store %arg4[%c0_19, %c0_20, %c0_21], %44 {strides = array<i32>} : memref<1x8x128xf32, #tpu.memory_space<vmem>>, vector<1x8x128xf32>,
    } else {
    }
    %c0 = arith.constant 0 : index
    %c0_1 = arith.constant 0 : index
    %3 = vector.load %arg2[%c0, %c0_1] : memref<16x128xf32, #tpu.memory_space<vmem>>, vector<16x128xf32>
    %c0_2 = arith.constant 0 : index
    %c0_3 = arith.constant 0 : index
    %4 = vector.load %arg3[%c0_2, %c0_3] : memref<16x128xf32, #tpu.memory_space<vmem>>, vector<16x128xf32>
    %5 = arith.subf %3, %4 : vector<16x128xf32>
    %6 = math.absf %5 : vector<16x128xf32>
    %7 = arith.mulf %5, %5 : vector<16x128xf32>
    %cst = arith.constant 1.000000e+00 : f32
    %8 = vector.broadcast %cst : f32 to vector<16x128xf32>
    %9 = arith.cmpf olt, %6, %8 : vector<16x128xf32>
    %cst_4 = arith.constant 5.000000e-01 : f32
    %10 = vector.broadcast %cst_4 : f32 to vector<16x128xf32>
    %11 = arith.mulf %10, %7 : vector<16x128xf32>
    %cst_5 = arith.constant 5.000000e-01 : f32
    %12 = vector.broadcast %cst_5 : f32 to vector<16x128xf32>
    %13 = arith.subf %6, %12 : vector<16x128xf32>
    %14 = arith.select %9, %11, %13 : vector<16x128xi1>, vector<16x128xf32>
    %cst_6 = arith.constant 5.000000e-01 : f32
    %15 = vector.broadcast %cst_6 : f32 to vector<16x128xf32>
    %16 = arith.mulf %15, %7 : vector<16x128xf32>
    %cst_7 = arith.constant 3.000000e-01 : f32
    %17 = vector.broadcast %cst_7 : f32 to vector<16x128xf32>
    %18 = arith.mulf %17, %6 : vector<16x128xf32>
    %19 = arith.addf %16, %18 : vector<16x128xf32>
    %cst_8 = arith.constant 2.000000e-01 : f32
    %20 = vector.broadcast %cst_8 : f32 to vector<16x128xf32>
    %21 = arith.mulf %20, %14 : vector<16x128xf32>
    %22 = arith.addf %19, %21 : vector<16x128xf32>
    %c1_i32 = arith.constant 1 : i32
    %23 = arith.muli %arg0, %c1_i32 : i32
    %24 = arith.addi %23, %arg1 : i32
    %c16_i32 = arith.constant 16 : i32
    %25 = arith.muli %24, %c16_i32 : i32
    %26 = tpu.iota {dimensions = array<i32: 0>} : vector<16x128xi32>
    %27 = vector.broadcast %25 : i32 to vector<16x128xi32>
    %28 = arith.addi %27, %26 : vector<16x128xi32>
    %c16_i32_9 = arith.constant 16 : i32
    %29 = vector.broadcast %c16_i32_9 : i32 to vector<16x128xi32>
    %30 = arith.cmpi slt, %28, %29 : vector<16x128xi32>
    %cst_10 = arith.constant 0.000000e+00 : f32
    %31 = vector.broadcast %cst_10 : f32 to vector<16x128xf32>
    %32 = arith.select %30, %22, %31 : vector<16x128xi1>, vector<16x128xf32>
    %c0_11 = arith.constant 0 : index
    %c0_12 = arith.constant 0 : index
    %c0_13 = arith.constant 0 : index
    %33 = vector.load %arg4[%c0_11, %c0_12, %c0_13] : memref<1x8x128xf32, #tpu.memory_space<vmem>>, vector<1x8x128xf32>
    %34 = vector.shape_cast %33 : vector<1x8x128xf32> to vector<8x128xf32>
    %35 = vector.shape_cast %32 : vector<16x128xf32> to vector<2x8x128xf32>
    %cst_14 = arith.constant dense<0.000000e+00> : vector<8x128xf32>
    %36 = vector.multi_reduction <add>, %35, %cst_14 [0] : vector<2x8x128xf32> to vector<8x128xf32>
    %37 = arith.addf %34, %36 : vector<8x128xf32>
    %c0_15 = arith.constant 0 : index
    %c0_16 = arith.constant 0 : index
    %c0_17 = arith.constant 0 : index
    %38 = vector.load %arg4[%c0_15, %c0_16, %c0_17] : memref<1x8x128xf32, #tpu.memory_space<vmem>>, vector<1x8x128xf32>
    %39 = vector.shape_cast %38 : vector<1x8x128xf32> to vector<8x128xf32>
    %40 = vector.shape_cast %37 : vector<8x128xf32> to vector<1x8x128xf32>
    tpu.vector_store %arg4[%c0_15, %c0_16, %c0_17], %40 {strides = array<i32>} : memref<1x8x128xf32, #tpu.memory_space<vmem>>, vector<1x8x128xf32>,
    return
  }
  func.func @transform_0(%arg0: i32, %arg1: i32) -> (i32, i32) {
    %c1_i32 = arith.constant 1 : i32
    %0 = arith.muli %arg0, %c1_i32 : i32
    %1 = arith.addi %0, %arg1 : i32
    %c0_i32 = arith.constant 0 : i32
    %2 = arith.minsi %1, %c0_i32 : i32
    %c0_i32_0 = arith.constant 0 : i32
    %c0_i32_1 = arith.constant 0 : i32
    return %2, %c0_i32_0 : i32, i32
  }
  func.func @transform_1(%arg0: i32, %arg1: i32) -> (i32, i32) {
    %c1_i32 = arith.constant 1 : i32
    %0 = arith.muli %arg0, %c1_i32 : i32
    %1 = arith.addi %0, %arg1 : i32
    %c0_i32 = arith.constant 0 : i32
    %2 = arith.minsi %1, %c0_i32 : i32
    %c0_i32_0 = arith.constant 0 : i32
    %c0_i32_1 = arith.constant 0 : i32
    return %2, %c0_i32_0 : i32, i32
  }
  func.func @transform_2(%arg0: i32, %arg1: i32) -> (i32, i32, i32) {
    %c0_i32 = arith.constant 0 : i32
    %c0_i32_0 = arith.constant 0 : i32
    %c0_i32_1 = arith.constant 0 : i32
    return %arg0, %c0_i32, %c0_i32_0 : i32, i32, i32
  }
}

</mosaic_0001>

<bundles_post_ra>
// kernel: tpu_custom_call.1
= control target key start
LH: loop header
LB: loop body
LE: loop exit
PB: predicated region body
PF: predicated region fallthrough
CT: control target
= control target key end

     0   :  { %7 = vsyncpa [#allocation3], 0  ;;  %s248_s0 = inlined_call_operand.hbm [shape: f32[16,128], index: 0, kind: input, shape index: {}]   ;;  %s249_s1 = inlined_call_operand.hbm [shape: f32[16,128], index: 1, kind: input, shape index: {}]   ;;  %s250_s2 = inlined_call_operand.hbm [shape: f32[1,8,128], index: 2, kind: output, shape index: {}]  }
   0x1   :  { %8 = vsyncpa [#allocation6], 0 }
   0x2   :  { %9 = vsyncpa [#allocation4], 0  ;;  %s20_s11 = sshll.u32 %s248_s0, 4  ;;  %s219_s12 = smov [#allocation2]   ;;  %s21_s11 = int_to_ptr.hbm [resolvable:$true] %s20_s11 }
   0x3   :  { %s22_s13 = sshll.u32 %s219_s12, 4  ;;  %s39_s16 = sshll.u32 %s249_s1, 4  ;;  %s23_s13 = int_to_ptr.vmem [resolvable:$true] %s22_s13  ;;  %s40_s16 = int_to_ptr.hbm [resolvable:$true] %s39_s16 }
   0x4   :  { %s220_s17 = smov 128   ;;  %s221_s18 = smov 8  }
   0x5   :  { %28 = dma.hbm_to_vmem [thread:$0]  %s21_s11, 256, %s23_s13, [#allocation3], %s220_s17, %s220_s17, %s221_s18  }
   0x6   :  { %s222_s19 = smov [#allocation5]  }
   0x7   :  { %s41_s20 = sshll.u32 %s222_s19, 4  ;;  %s42_s20 = int_to_ptr.vmem [resolvable:$true] %s41_s20 }
   0x8   :  { %47 = dma.hbm_to_vmem [thread:$0]  %s40_s16, 256, %s42_s20, [#allocation6], %s220_s17, %s220_s17, %s221_s18  }
   0x9   :  { %213 = dma.done.wait [#allocation3], 256  }
   0xa   :  { %214 = vsyncadd [#allocation3], 4294967040 }
   0xb   :  { %215 = dma.done.wait [#allocation6], 256  }
   0xc   :  { %216 = vsyncadd [#allocation6], 4294967040  ;;  %v69_v0 = vld [vmem:[#allocation2] sm:$0xff]  ;;  %v70_v1 = vld [vmem:[#allocation2 + $0x8] sm:$0xff]  ;;  %s223_s0 = smov [#allocation7]   ;;  %s118_s23 = sshll.u32 %s250_s2, 4  ;;  %s119_s23 = int_to_ptr.hbm [resolvable:$true] %s118_s23 }
   0xd   :  { %v71_v2 = vld [vmem:[#allocation5] sm:$0xff]  ;;  %v72_v3 = vld [vmem:[#allocation5 + $0x8] sm:$0xff]  ;;  %s116_s1 = sshll.u32 %s223_s0, 4  ;;  %s117_s1 = int_to_ptr.vmem [resolvable:$true] %s116_s1 }
   0xe   :  { %v73_v4 = vsub.f32 %v69_v0, %v71_v2  ;;  %v74_v5 = vsub.f32 %v70_v1, %v72_v3 }
  0x10   :  { %v75_v6 = vand.u32 2147483647, %v73_v4  ;;  %v77_v7 = vmul.f32 %v73_v4, %v73_v4  ;;  %v76_v8 = vand.u32 2147483647, %v74_v5  ;;  %v78_v9 = vmul.f32 %v74_v5, %v74_v5 }
  0x12   :  { %vm79_vm0 = vcmp.lt.f32.partialorder %v75_v6, 1.0  ;;  %v81_v10 = vmul.f32 0.5, %v77_v7  ;;  %v133_v11 = vadd.f32 -0.5, %v75_v6  ;;  %v87_v12 = vmul.f32 0.3, %v75_v6 }
  0x13   :  { %vm80_vm1 = vcmp.lt.f32.partialorder %v76_v8, 1.0  ;;  %v82_v13 = vmul.f32 0.5, %v78_v9  ;;  %v134_v14 = vadd.f32 -0.5, %v76_v8  ;;  %v88_v15 = vmul.f32 0.3, %v76_v8 }
  0x14   :  { %v85_v16 = vsel %vm79_vm0, %v81_v10, %v133_v11  ;;  %v89_v17 = vadd.f32 %v87_v12, %v81_v10 }
  0x15   :  { %v86_v18 = vsel %vm80_vm1, %v82_v13, %v134_v14  ;;  %v90_v19 = vadd.f32 %v88_v15, %v82_v13  ;;  %v91_v20 = vmul.f32 0.2, %v85_v16 }
  0x16   :  { %v92_v21 = vmul.f32 0.2, %v86_v18 }
  0x17   :  { %v93_v22 = vadd.f32 %v91_v20, %v89_v17 }
  0x18   :  { %v94_v23 = vadd.f32 %v92_v21, %v90_v19 }
  0x1a   :  { %v108_v24 = vadd.f32 %v94_v23, %v93_v22 }
  0x1c   :  { %110 = vst [vmem:[#allocation7] sm:$0xff] %v108_v24 }
  0x1d   :  { %121 = dma.vmem_to_hbm [thread:$0]  %s117_s1, 128, %s119_s23, [#allocation4]  }
  0x1e   :  { %217 = dma.done.wait [#allocation4], 128  }
  0x1f   :  { %218 = vsyncadd [#allocation4], 4294967168 }
  0x20   :  { %126 = vsyncpa [#allocation3], 1 }
  0x21   :  { %127 = vsyncpa [#allocation6], 1 }
  0x22   :  { %128 = vsyncpa [#allocation4], 1 }

</bundles_post_ra>
